<compile_context>
chip_gen: v6e
topology: v6e:2x2x1
jax: 0.10.0
libtpu: 0.0.40
codegen_flags: <defaults>
</compile_context>

<pallas_src>
import jax
import jax.numpy as jnp
from jax.experimental import pallas as pl
from jax.experimental.pallas import tpu as pltpu

_LANE_WIDTHS = (4096, 2048, 1024, 512, 256, 128)   # widest lane-dense row first

_BLOCK_BYTES_CACHE = None


def _data_block_bytes() -> int:
    """Bytes of real data per grid block (per input block and per output block)."""
    global _BLOCK_BYTES_CACHE
    if _BLOCK_BYTES_CACHE is None:
        block = 4 * 1024 * 1024                      # v5e / v6e sweet spot
        try:
            # v7x-class parts report <=64 MiB VMEM per TensorCore but have ~3.2 TB/s
            # HBM, so the ~0.35us per-grid-step cost is worth amortizing with 8 MiB.
            if pltpu.get_tpu_info().vmem_capacity_bytes <= 64 * 1024 * 1024:
                block = 8 * 1024 * 1024
        except Exception:                            # query unavailable -> safe default
            pass
        _BLOCK_BYTES_CACHE = block
    return _BLOCK_BYTES_CACHE


def rational_kernel(c_ref, x_ref, o_ref):
    """c_ref: SMEM f32[7] = [p3, p2, p1, p0, q2, q1, q0].
       x_ref / o_ref: VMEM tiles (input dtype); math is done in f32."""
    x = x_ref[...].astype(jnp.float32)
    p3, p2, p1, p0 = c_ref[0], c_ref[1], c_ref[2], c_ref[3]
    q2, q1, q0 = c_ref[4], c_ref[5], c_ref[6]
    p = ((p3 * x + p2) * x + p1) * x + p0
    q = (q2 * x + q1) * x + q0                       # q3 is forced to 0 by forward()
    o_ref[...] = (p * pl.reciprocal(q, approx=False)).astype(o_ref.dtype)


def prepare_coeffs(coeffs: jax.Array) -> jax.Array:
    """(4,2) parameter -> (7,) f32 [p3,p2,p1,p0,q2,q1,q0].  Call once per layer
    (hoisted out of the per-activation path)."""
    coeffs = coeffs.at[0, 1].set(0.0)                # forward() zeroes Q's cubic term
    return jnp.concatenate([coeffs[:, 0], coeffs[1:, 1]]).astype(jnp.float32)


def _rational_call(cvec, x2d, block_shape, index_map, grid, donate):
    n_bytes = x2d.size * x2d.dtype.itemsize
    block_bytes = _data_block_bytes()
    return pl.pallas_call(
        rational_kernel,
        out_shape=jax.ShapeDtypeStruct(x2d.shape, x2d.dtype),
        grid=grid,
        in_specs=[
            pl.BlockSpec(memory_space=pltpu.MemorySpace.SMEM),   # coeffs (scalars)
            pl.BlockSpec(block_shape, index_map),                # x tile
        ],
        out_specs=pl.BlockSpec(block_shape, index_map),
        compiler_params=pltpu.CompilerParams(
            dimension_semantics=("parallel",),
            # in/out double-buffered -> 4 * block + headroom; comfortably below
            # physical VMEM on v5e/v6e (128 MiB) and v7x (64 MiB per TensorCore).
            vmem_limit_bytes=4 * block_bytes + (8 << 20),
        ),
        cost_estimate=pl.CostEstimate(
            flops=12 * x2d.size,            # Horner P(6) + Q(4) + recip + final mul
            transcendentals=0,              # full-precision reciprocal is not EUP
            bytes_accessed=2 * n_bytes,     # stream in + stream out (HBM-bound)
        ),
        input_output_aliases=({1: 0} if donate else {}),
    )(cvec, x2d)


def rational_forward(x: jax.Array, coeffs: jax.Array, *, donate: bool = False) -> jax.Array:
    """Rational activation.  `coeffs` is either the raw (4,2) parameter or the
    prepared (7,) vector from prepare_coeffs().  Set donate=True only if the
    caller can give up x's buffer (result is written in place)."""
    cvec = coeffs if coeffs.ndim == 1 else prepare_coeffs(coeffs)

    orig_shape = x.shape
    n = x.size
    if n == 0:
        return x
    itemsize = x.dtype.itemsize
    block_bytes = _data_block_bytes()
    flat = x.reshape(-1)

    width = next((w for w in _LANE_WIDTHS if n % w == 0), None)
    if width is not None:
        # Primary path: lane-dense (rows, width) view, blocked along rows.
        rows = n // width
        x2d = flat.reshape(rows, width)
        tm_max = max(8, block_bytes // (width * itemsize))   # dtype-aware block rows
        if rows <= tm_max:
            tm = rows
            if rows >= 16:
                # Whole tensor would fit one block: split in two anyway so both v7x
                # TensorCores get a block (no effect on 1-TC v5e/v6e).
                tm = ((pl.cdiv(rows, 2) + 7) // 8) * 8
        else:
            tm = tm_max
        # Ragged last row-block: Pallas masks its out-of-bounds output writes; the
        # out-of-bounds input rows are whatever was left in VMEM, and their (junk)
        # results are simply discarded.
        out2d = _rational_call(cvec, x2d, (tm, width), lambda i: (i, 0),
                               (pl.cdiv(rows, tm),), donate)
    else:
        # Fallback (n not a multiple of 128): stream a (1, n) view blocked along the
        # lane dim.  No jnp.pad / output slice -> no extra HBM pass over x.  The
        # ragged last block is handled exactly as above (OOB output writes dropped,
        # OOB input lanes are stale VMEM whose results are discarded).
        x2d = flat.reshape(1, n)
        # A (1, L) block occupies ~8x its data in VMEM (one sublane per (8,128) tile),
        # so cap the lane extent such that each VMEM buffer stays ~block_bytes.
        lane_blk = max(128, (block_bytes // (8 * itemsize)) // 128 * 128)
        tn = n if n <= lane_blk else lane_blk
        out2d = _rational_call(cvec, x2d, (1, tn), lambda i: (0, i),
                               (pl.cdiv(n, tn),), donate)

    return out2d.reshape(orig_shape)


def rational_reference(x: jax.Array, coeffs: jax.Array) -> jax.Array:
    """Pure-JAX mirror of the PyTorch forward (accumulated in f32 for comparison)."""
    coeffs = coeffs.at[0, 1].set(0.0).astype(jnp.float32)
    exp = jnp.array([3.0, 2.0, 1.0, 0.0], dtype=jnp.float32)
    X = jnp.power(x.astype(jnp.float32)[..., None], exp)     # (..., 4)
    PQ = X @ coeffs                                           # (..., 2)
    return (PQ[..., 0] / PQ[..., 1]).astype(x.dtype)


if __name__ == "__main__":
    # Deterministic parameter init (reset_parameters()).
    coeffs = jnp.array(
        [[1.1915, 0.0],
         [1.5957, 2.383],
         [0.5,    0.0],
         [0.0218, 1.0]],
        dtype=jnp.float32,
    )
    cvec = prepare_coeffs(coeffs)      # hoisted out of the per-activation call path

    key = jax.random.PRNGKey(0)
    k1, k2 = jax.random.split(key)

    # Primary lane-dense path: small NCHW-like input (2*4*16*16 = 2048 elements).
    x = jax.random.normal(k1, (2, 4, 16, 16), dtype=jnp.float32)
    out = jax.block_until_ready(rational_forward(x, cvec))
    ref = rational_reference(x, coeffs)
    assert out.shape == x.shape and out.dtype == x.dtype
    assert jnp.allclose(out, ref, atol=1e-5, rtol=1e-5), "primary path mismatch"

    # Padding-free fallback path: awkward size (3*5*7 = 105, not a multiple of 128).
    x2 = jax.random.normal(k2, (3, 5, 7), dtype=jnp.float32)
    out2 = jax.block_until_ready(rational_forward(x2, cvec))
    ref2 = rational_reference(x2, coeffs)
    assert out2.shape == x2.shape and out2.dtype == x2.dtype
    assert jnp.allclose(out2, ref2, atol=1e-5, rtol=1e-5), "fallback path mismatch"

    print("KERNEL_OK")
</pallas_src>

<mosaic_0001>
module attributes {stable_mosaic.version = 11 : i64} {
  func.func @rational_kernel(%arg0: i32, %arg1: memref<7xf32, #tpu.memory_space<smem>>, %arg2: memref<1x2048xf32, #tpu.memory_space<vmem>>, %arg3: memref<1x2048xf32, #tpu.memory_space<vmem>>) attributes {dimension_semantics = [#tpu.dimension_semantics<parallel>], iteration_bounds = array<i64: 1>, scalar_prefetch = 0 : i64, scratch_operands = 0 : i64, tpu.core_type = #tpu.core_type<tc>, window_params = [{transform_indices = @transform_0, window_bounds = array<i64: 7>}, {transform_indices = @transform_1, window_bounds = array<i64: 1, 2048>}, {transform_indices = @transform_2, window_bounds = array<i64: 1, 2048>}]} {
    %c0 = arith.constant 0 : index
    %c0_0 = arith.constant 0 : index
    %0 = vector.load %arg2[%c0, %c0_0] : memref<1x2048xf32, #tpu.memory_space<vmem>>, vector<1x2048xf32>
    %c0_1 = arith.constant 0 : index
    %1 = memref.load %arg1[%c0_1] : memref<7xf32, #tpu.memory_space<smem>>
    %c1 = arith.constant 1 : index
    %2 = memref.load %arg1[%c1] : memref<7xf32, #tpu.memory_space<smem>>
    %c2 = arith.constant 2 : index
    %3 = memref.load %arg1[%c2] : memref<7xf32, #tpu.memory_space<smem>>
    %c3 = arith.constant 3 : index
    %4 = memref.load %arg1[%c3] : memref<7xf32, #tpu.memory_space<smem>>
    %c4 = arith.constant 4 : index
    %5 = memref.load %arg1[%c4] : memref<7xf32, #tpu.memory_space<smem>>
    %c5 = arith.constant 5 : index
    %6 = memref.load %arg1[%c5] : memref<7xf32, #tpu.memory_space<smem>>
    %c6 = arith.constant 6 : index
    %7 = memref.load %arg1[%c6] : memref<7xf32, #tpu.memory_space<smem>>
    %8 = vector.broadcast %1 : f32 to vector<1x2048xf32>
    %9 = arith.mulf %8, %0 : vector<1x2048xf32>
    %10 = vector.broadcast %2 : f32 to vector<1x2048xf32>
    %11 = arith.addf %9, %10 : vector<1x2048xf32>
    %12 = arith.mulf %11, %0 : vector<1x2048xf32>
    %13 = vector.broadcast %3 : f32 to vector<1x2048xf32>
    %14 = arith.addf %12, %13 : vector<1x2048xf32>
    %15 = arith.mulf %14, %0 : vector<1x2048xf32>
    %16 = vector.broadcast %4 : f32 to vector<1x2048xf32>
    %17 = arith.addf %15, %16 : vector<1x2048xf32>
    %18 = vector.broadcast %5 : f32 to vector<1x2048xf32>
    %19 = arith.mulf %18, %0 : vector<1x2048xf32>
    %20 = vector.broadcast %6 : f32 to vector<1x2048xf32>
    %21 = arith.addf %19, %20 : vector<1x2048xf32>
    %22 = arith.mulf %21, %0 : vector<1x2048xf32>
    %23 = vector.broadcast %7 : f32 to vector<1x2048xf32>
    %24 = arith.addf %22, %23 : vector<1x2048xf32>
    %25 = tpu.reciprocal %24 : vector<1x2048xf32> -> vector<1x2048xf32>
    %26 = arith.mulf %17, %25 : vector<1x2048xf32>
    %c0_2 = arith.constant 0 : index
    %c0_3 = arith.constant 0 : index
    %27 = vector.load %arg3[%c0_2, %c0_3] : memref<1x2048xf32, #tpu.memory_space<vmem>>, vector<1x2048xf32>
    tpu.vector_store %arg3[%c0_2, %c0_3], %26 {strides = array<i32>} : memref<1x2048xf32, #tpu.memory_space<vmem>>, vector<1x2048xf32>,
    return
  }
  func.func @transform_0(%arg0: i32) -> i32 {
    %c0_i32 = arith.constant 0 : i32
    %c0_i32_0 = arith.constant 0 : i32
    return %c0_i32 : i32
  }
  func.func @transform_1(%arg0: i32) -> (i32, i32) {
    %c0_i32 = arith.constant 0 : i32
    %c0_i32_0 = arith.constant 0 : i32
    return %arg0, %c0_i32 : i32, i32
  }
  func.func @transform_2(%arg0: i32) -> (i32, i32) {
    %c0_i32 = arith.constant 0 : i32
    %c0_i32_0 = arith.constant 0 : i32
    return %arg0, %c0_i32 : i32, i32
  }
}

</mosaic_0001>

<bundles_post_ra>
// kernel: tpu_custom_call.1
= control target key start
LH: loop header
LB: loop body
LE: loop exit
PB: predicated region body
PF: predicated region fallthrough
CT: control target
= control target key end

     0   :  { %7 = vsyncpa [#allocation5], 0  ;;  %s187_s0 = inlined_call_operand.hbm [shape: f32[7], index: 0, kind: input, shape index: {}]   ;;  %s188_s1 = inlined_call_operand.hbm [shape: f32[1,2048], index: 1, kind: input, shape index: {}]   ;;  %s189_s2 = inlined_call_operand.hbm [shape: f32[1,2048], index: 2, kind: output, shape index: {}]  }
   0x1   :  { %8 = vsyncpa [#allocation3], 0 }
   0x2   :  { %9 = vsyncpa [#allocation4], 0  ;;  %s160_s9 = smov [#allocation2]   ;;  %s161_s12 = smov [#allocation6]  }
   0x3   :  { %17 = dma.hbm_to_smem %s187_s0, 16, %s160_s9, [#allocation5]  }
   0x4   :  { %s24_s13 = sshll.u32 %s161_s12, 4  ;;  %s25_s13 = int_to_ptr.vmem [resolvable:$true] %s24_s13 }
   0x5   :  { %s122_s14 = scalar_lea.vmem %s25_s13, 256  ;;  %p127_p1 = scmp.lt.s32.totalorder %s25_s13, %s25_s13 }
   0x6   :  { %p123_p0 = scmp.ne.s32.totalorder %s25_s13, %s122_s14  ;;  %p128_p2 = scmp.lt.s32.totalorder %s122_s14, %s122_s14 }
   0x8   :  { %p129_p3 = por %p128_p2, %p127_p1 }
   0xa   :  { %p130_p4 = pnand %p129_p3, %p123_p0 }
   0xc   :  { %133 = shalt.err (!%p130_p4)
}
   0xd   :  { %27 = dma.hbm_to_vmem [thread:$0]  %s188_s1, 256, %s25_s13, [#allocation3]  }
   0xe   :  { %154 = dma.done.wait [#allocation5], 16  }
   0xf   :  { %155 = vsyncadd [#allocation5], 4294967280 }
  0x10   :  { %156 = dma.done.wait [#allocation3], 256  }
  0x11   :  { %157 = vsyncadd [#allocation3], 4294967040 }
  0x12   :  { %34 = sfence }
  0x13   :  { %s37_s0 = sld [smem:[#allocation2]]  ;;  %v35_v1 = vld [vmem:[#allocation6] sm:$0xff]  ;;  %v36_v3 = vld [vmem:[#allocation6 + $0x8] sm:$0xff]  ;;  %s162_s22 = smov [#allocation7]  }
  0x14   :  { %s93_s17 = sld [smem:[#allocation2 + $0x1]]  ;;  %s83_s23 = sshll.u32 %s162_s22, 4  ;;  %s84_s23 = int_to_ptr.vmem [resolvable:$true] %s83_s23 }
  0x15   :  { %s96_s18 = sld [smem:[#allocation2 + $0x4]]  ;;  %s134_s24 = scalar_lea.vmem %s84_s23, 256 }
  0x16   :  { %s97_s19 = sld [smem:[#allocation2 + $0x5]]  ;;  %p135_p5 = scmp.ne.s32.totalorder %s84_s23, %s134_s24 }
  0x17   :  { %s98_s20 = sld [smem:[#allocation2 + $0x6]]  ;;  %p139_p6 = scmp.lt.s32.totalorder %s84_s23, %s84_s23 }
  0x18   :  { %s94_s21 = sld [smem:[#allocation2 + $0x2]]  ;;  %p140_p7 = scmp.lt.s32.totalorder %s134_s24, %s134_s24 }
  0x19   :  { %v44_v0 = vstv %s37_s0  ;;  %s95_s1 = sld [smem:[#allocation2 + $0x3]] }
  0x1a   :  { %v45_v2 = vmul.f32 %v44_v0, %v35_v1  ;;  %v47_v4 = vstv %s93_s17  ;;  %v46_v6 = vmul.f32 %v44_v0, %v36_v3  ;;  %p141_p8 = por %p140_p7, %p139_p6 }
  0x1b   :  { %v60_v5 = vstv %s96_s18 }
  0x1c   :  { %v61_v7 = vmul.f32 %v60_v5, %v35_v1  ;;  %v63_v8 = vstv %s97_s19  ;;  %v62_v9 = vmul.f32 %v60_v5, %v36_v3  ;;  %v48_v10 = vadd.f32 %v47_v4, %v45_v2  ;;  %p142_p9 = pnand %p141_p8, %p135_p5 }
  0x1d   :  { %v68_v12 = vstv %s98_s20  ;;  %v49_v13 = vadd.f32 %v47_v4, %v46_v6 }
  0x1e   :  { %v64_v11 = vadd.f32 %v63_v8, %v61_v7  ;;  %v65_v14 = vadd.f32 %v63_v8, %v62_v9  ;;  %v50_v17 = vmul.f32 %v48_v10, %v35_v1  ;;  %v52_v19 = vstv %s94_s21 }
  0x1f   :  { %v51_v20 = vmul.f32 %v49_v13, %v36_v3  ;;  %v57_v25 = vstv %s95_s1 }
  0x20   :  { %v66_v15 = vmul.f32 %v64_v11, %v35_v1  ;;  %v67_v16 = vmul.f32 %v65_v14, %v36_v3  ;;  %v53_v22 = vadd.f32 %v52_v19, %v50_v17 }
  0x21   :  { %v54_v23 = vadd.f32 %v52_v19, %v51_v20 }
  0x22   :  { %v69_v18 = vadd.f32 %v68_v12, %v66_v15  ;;  %v70_v21 = vadd.f32 %v68_v12, %v67_v16  ;;  %v55_v24 = vmul.f32 %v53_v22, %v35_v1 }
  0x23   :  { %v56_v26 = vmul.f32 %v54_v23, %v36_v3 }
  0x24   :  { %102 = vrcp.f32 %v69_v18  ;;  %v58_v27 = vadd.f32 %v57_v25, %v55_v24 }
  0x25   :  { %104 = vrcp.f32 %v70_v21  ;;  %v59_v28 = vadd.f32 %v57_v25, %v56_v26 }
  0x31   :  { %v103_v29 = vpop.eup %102 }
  0x32   :  { %v105_v30 = vpop.eup %104  ;;  %v73_v31 = vmul.f32 %v103_v29, %v58_v27 }
  0x33   :  { %v74_v32 = vmul.f32 %v105_v30, %v59_v28 }
  0x34   :  { %75 = vst [vmem:[#allocation7] sm:$0xff] %v73_v31 }
  0x35   :  { %76 = vst [vmem:[#allocation7 + $0x8] sm:$0xff] %v74_v32 }
  0x36   :  { %145 = shalt.err (!%p142_p9)
}
  0x37   :  { %86 = dma.vmem_to_hbm [thread:$0]  %s84_s23, 256, %s189_s2, [#allocation4]  }
  0x38   :  { %158 = dma.done.wait [#allocation4], 256  }
  0x39   :  { %159 = vsyncadd [#allocation4], 4294967040 }
  0x3a   :  { %90 = vsyncpa [#allocation3], 1 }
  0x3b   :  { %91 = vsyncpa [#allocation4], 1 }
  0x3c   :  { %92 = vsyncpa [#allocation5], 1 }

</bundles_post_ra>
